<compile_context>
chip_gen: v7x
topology: tpu7x:2x2x1
jax: 0.10.0
libtpu: 0.0.40
codegen_flags: <defaults>
</compile_context>

<pallas_src>
import numpy as np
import jax
import jax.numpy as jnp
from jax import lax
from jax.experimental import pallas as pl
from jax.experimental.pallas import tpu as pltpu


def _round_up(x, m):
    return ((x + m - 1) // m) * m


# Tile sizes (sublane-aligned TP, lane-aligned TN).  Sized so that the handful of
# (TP, TN) f32 temporaries stay well under the scoped-VMEM default on every
# generation (256*1024*4B = 1 MiB per temp), leaving room for pipelining.
_TP_MAX = 256
_TN_MAX = 1024


def _pauc_cvar_kernel(num_neg_ref, fp_ref, fnm_ref, up_ref,
                      row_loss_ref, row_cnt_ref):
    """One (TP, TN) tile of the pairwise CVaR partial-AUC loss.

    fp_ref : (TP, 1)  positive scores (padded rows = +1e30 -> hinge 0)
    fnm_ref: (1, TN)  negative scores + margin (padded cols = -1e30 -> hinge 0)
    up_ref : (TP, 1)  u_pos gathered at index_p (padded rows = 0)
    Outputs (resident across the N grid axis, accumulated in place):
      row_loss_ref: (TP, 1) sum_j p_ij * loss_ij
      row_cnt_ref : (TP, 1) sum_j p_ij          (p = indicator loss > u)
    """
    nk = pl.program_id(1)
    tn = fnm_ref.shape[1]

    @pl.when(nk == 0)
    def _init():
        row_loss_ref[...] = jnp.zeros_like(row_loss_ref)
        row_cnt_ref[...] = jnp.zeros_like(row_cnt_ref)

    fp = fp_ref[...]            # (TP, 1)
    fnm = fnm_ref[...]          # (1, TN)
    up = up_ref[...]            # (TP, 1)

    # squared_hinge(margin, f_p - f_n) == max((f_n + margin) - f_p, 0)^2
    hinge = jnp.maximum(fnm - fp, 0.0)          # (TP, TN)
    loss = hinge * hinge                        # (TP, TN)
    cond = loss > up                            # (TP, TN)

    # Column validity (only matters on the last N tile): padded columns have
    # loss == 0, which must not be counted when u_pos < 0.
    col_ids = nk * tn + lax.broadcasted_iota(jnp.int32, (1, tn), 1)
    colmask = (col_ids < num_neg_ref[0]).astype(jnp.float32)   # (1, TN)

    p_loss = jnp.where(cond, loss, 0.0)         # padded entries contribute 0
    cnt = jnp.where(cond, colmask, 0.0)         # count only valid columns

    # Lane-axis reductions go to the XLU slot; accumulate in the resident outputs.
    row_loss_ref[...] += jnp.sum(p_loss, axis=1, keepdims=True)
    row_cnt_ref[...] += jnp.sum(cnt, axis=1, keepdims=True)


def _pauc_cvar_pairwise(f_ps, f_ns, u_p, margin):
    """Tiled Pallas evaluation of the pairwise loss.

    f_ps: (P,) f32, f_ns: (N,) f32, u_p: (P,) f32.
    Returns (loss_sum scalar = sum p*loss over valid pairs, row_sum (P, 1) counts).
    """
    P = int(f_ps.shape[0])
    N = int(f_ns.shape[0])
    TP = min(_TP_MAX, _round_up(P, 8))
    TN = min(_TN_MAX, _round_up(N, 128))
    P_pad = _round_up(P, TP)
    N_pad = _round_up(N, TN)

    # Padding values chosen so padded rows/cols produce hinge == 0 (and thus
    # loss == 0), which removes the need for full-matrix validity masks.
    fp_pad = jnp.full((P_pad, 1), 1e30, jnp.float32).at[:P, 0].set(
        f_ps.astype(jnp.float32))
    fnm_pad = jnp.full((1, N_pad), -1e30, jnp.float32).at[0, :N].set(
        f_ns.astype(jnp.float32) + jnp.float32(margin))
    up_pad = jnp.zeros((P_pad, 1), jnp.float32).at[:P, 0].set(
        u_p.astype(jnp.float32))
    num_neg_arr = jnp.asarray([N], jnp.int32)

    grid = (P_pad // TP, N_pad // TN)

    row_loss, row_cnt = pl.pallas_call(
        _pauc_cvar_kernel,
        out_shape=(
            jax.ShapeDtypeStruct((P_pad, 1), jnp.float32),
            jax.ShapeDtypeStruct((P_pad, 1), jnp.float32),
        ),
        grid_spec=pltpu.PrefetchScalarGridSpec(
            num_scalar_prefetch=1,
            grid=grid,
            in_specs=[
                pl.BlockSpec((TP, 1), lambda pi, nk, nn: (pi, 0)),
                pl.BlockSpec((1, TN), lambda pi, nk, nn: (0, nk)),
                pl.BlockSpec((TP, 1), lambda pi, nk, nn: (pi, 0)),
            ],
            out_specs=(
                pl.BlockSpec((TP, 1), lambda pi, nk, nn: (pi, 0)),
                pl.BlockSpec((TP, 1), lambda pi, nk, nn: (pi, 0)),
            ),
        ),
        compiler_params=pltpu.CompilerParams(
            dimension_semantics=("parallel", "arbitrary")),
    )(num_neg_arr, fp_pad, fnm_pad, up_pad)

    loss_sum = jnp.sum(row_loss[:P, 0])
    return loss_sum, row_cnt[:P, :]


class PallasPAUCCVaRLoss:
    """JAX/Pallas port of libauc pAUC_CVaR_Loss (the 'SOPA' backend)."""

    def __init__(self, pos_len, num_neg=None, margin=1.0, alpha=0, beta=0.2,
                 surrogate_loss='squared_hinge'):
        assert surrogate_loss == 'squared_hinge'  # TODO(synk): 'squared'/'logistic' surrogate variants
        self.pos_len = int(pos_len)
        self.num_neg = num_neg
        self.margin = float(margin)
        self.alpha = alpha
        self.beta = float(beta)
        self.eta = 1.0
        # u_pos buffer, shape (pos_len, 1), init to zeros (deterministic)
        self.u_pos = jnp.zeros((self.pos_len, 1), jnp.float32)

    def __call__(self, y_pred, y_true, index_p, auto=True):
        y_pred = jnp.reshape(jnp.asarray(y_pred, jnp.float32), (-1,))
        # TODO(synk): the boolean positive/negative partition has data-dependent
        # sizes; done host-side (fixed-shape jittable partition would avoid the
        # host sync and recompiles across tile-boundary changes).
        y_true_np = np.asarray(y_true).reshape(-1)
        index_p_np = np.asarray(index_p).reshape(-1)

        pos_idx = np.nonzero(y_true_np == 1)[0]
        neg_idx = np.nonzero(y_true_np == 0)[0]
        P, N = len(pos_idx), len(neg_idx)
        assert P > 0 and N > 0

        idx_p = index_p_np[index_p_np >= 0]            # indices into u_pos, len P
        f_ps = y_pred[jnp.asarray(pos_idx)]            # (P,)
        f_ns = y_pred[jnp.asarray(neg_idx)]            # (N,)
        u_p = self.u_pos[jnp.asarray(idx_p), 0]        # (P,)

        if auto:
            num_neg = float(N)
        else:
            num_neg = float(self.num_neg)

        loss_sum, row_sum = _pauc_cvar_pairwise(f_ps, f_ns, u_p, self.margin)

        # u_pos[index_p] -= eta/pos_len * (1 - p.sum(dim=1, keepdim=True)/(beta*num_neg))
        new_u = u_p[:, None] - (self.eta / self.pos_len) * (
            1.0 - row_sum / (self.beta * num_neg))
        self.u_pos = self.u_pos.at[jnp.asarray(idx_p)].set(new_u)

        # loss = mean(p * loss) / beta
        return loss_sum / (P * N) / self.beta


class PallasPAUCLoss:
    """Port of libauc pAUCLoss wrapper (backend dispatch)."""

    def __init__(self, backend='SOPA', **kwargs):
        assert backend in ['SOPA', 'SOPAs', 'SOTA'], 'Keyword is not found!'
        print('Backend loss: %s' % backend)
        self.backend = backend
        if backend == 'SOPA':
            self.loss_fn = PallasPAUCCVaRLoss(**kwargs)
        else:
            # TODO(synk): SOPAs (pAUC_KLDRO_Loss, not provided) and SOTA (tpAUC_KL_Loss) backends
            raise NotImplementedError('Only SOPA backend is implemented in Pallas port')

    def __call__(self, y_pred, y_true, index_p):
        return self.loss_fn(y_pred, y_true, index_p)


def _reference_sopa(y_pred, y_true, index_p, u_pos, margin, beta, eta, pos_len):
    """Pure-numpy reference of pAUC_CVaR_Loss.forward (auto=True)."""
    y_pred = np.asarray(y_pred).reshape(-1, 1)
    y_true = np.asarray(y_true).reshape(-1, 1)
    index_p = np.asarray(index_p).reshape(-1)
    f_ps = y_pred[y_true == 1].reshape(-1, 1)
    f_ns = y_pred[y_true == 0].reshape(-1, 1)
    index_p = index_p[index_p >= 0]
    num_neg = float((y_true == 0).sum())
    diff = f_ps - f_ns.T
    loss = np.maximum(margin - diff, 0.0) ** 2
    u_p = u_pos[index_p]                       # (P,1)
    p = loss > u_p
    new_u = u_p - eta / pos_len * (1 - p.sum(axis=1, keepdims=True) / (beta * num_neg))
    u_pos_new = u_pos.copy()
    u_pos_new[index_p] = new_u
    return np.mean(p * loss) / beta, u_pos_new


def _run_case(key, batch, pos_len, num_pos_in_batch, margin=1.0, beta=0.2):
    k1, k2 = jax.random.split(key)
    y_pred = jax.random.normal(k1, (batch, 1), dtype=jnp.float32)
    perm = np.array(jax.random.permutation(k2, batch))
    y_true_np = np.zeros((batch,), dtype=np.float32)
    y_true_np[perm[:num_pos_in_batch]] = 1.0
    index_p_np = np.full((batch,), -1, dtype=np.int32)
    index_p_np[perm[:num_pos_in_batch]] = np.arange(num_pos_in_batch, dtype=np.int32)

    y_true = jnp.asarray(y_true_np).reshape(-1, 1)
    index_p = jnp.asarray(index_p_np)

    loss_mod = PallasPAUCLoss(backend='SOPA', pos_len=pos_len, margin=margin, beta=beta)
    u_pos_before = np.asarray(loss_mod.loss_fn.u_pos).copy()

    loss = loss_mod(y_pred, y_true, index_p)
    loss = jax.block_until_ready(loss)

    ref_loss, ref_u_pos = _reference_sopa(
        np.asarray(y_pred), y_true_np, index_p_np, u_pos_before,
        margin=margin, beta=beta, eta=1.0, pos_len=pos_len)
    np.testing.assert_allclose(float(loss), ref_loss, rtol=1e-5, atol=1e-6)
    np.testing.assert_allclose(np.asarray(loss_mod.loss_fn.u_pos), ref_u_pos,
                               rtol=1e-5, atol=1e-6)


if __name__ == "__main__":
    key = jax.random.PRNGKey(0)
    k_small, k_big = jax.random.split(key)

    # Small deterministic case (single tile): batch=16, 6 positives / 10 negatives.
    _run_case(k_small, batch=16, pos_len=8, num_pos_in_batch=6)

    # Larger case exercising the tiled N-axis accumulation + padding masks:
    # 21 positives, 1500 negatives -> grid (1, 2) with partially padded tiles.
    _run_case(k_big, batch=1521, pos_len=32, num_pos_in_batch=21)

    print("KERNEL_OK")
</pallas_src>

<mosaic_0001>
module attributes {stable_mosaic.version = 11 : i64} {
  func.func @_pauc_cvar_kernel(%arg0: i32, %arg1: i32, %arg2: memref<1xi32, #tpu.memory_space<smem>>, %arg3: memref<8x1xf32, #tpu.memory_space<vmem>>, %arg4: memref<1x128xf32, #tpu.memory_space<vmem>>, %arg5: memref<8x1xf32, #tpu.memory_space<vmem>>, %arg6: memref<8x1xf32, #tpu.memory_space<vmem>>, %arg7: memref<8x1xf32, #tpu.memory_space<vmem>>) attributes {dimension_semantics = [#tpu.dimension_semantics<parallel>, #tpu.dimension_semantics<arbitrary>], iteration_bounds = array<i64: 1, 1>, scalar_prefetch = 1 : i64, scratch_operands = 0 : i64, tpu.core_type = #tpu.core_type<tc>, window_params = [{transform_indices = @transform_0, window_bounds = array<i64: 8, 1>}, {transform_indices = @transform_1, window_bounds = array<i64: 1, 128>}, {transform_indices = @transform_2, window_bounds = array<i64: 8, 1>}, {transform_indices = @transform_3, window_bounds = array<i64: 8, 1>}, {transform_indices = @transform_4, window_bounds = array<i64: 8, 1>}]} {
    %c0_i32 = arith.constant 0 : i32
    %0 = arith.cmpi eq, %arg1, %c0_i32 : i32
    %1 = arith.extui %0 : i1 to i32
    %c0_i32_0 = arith.constant 0 : i32
    %2 = arith.cmpi ne, %1, %c0_i32_0 : i32
    scf.if %2 {
      %cst_19 = arith.constant 0.000000e+00 : f32
      %39 = vector.broadcast %cst_19 : f32 to vector<8x1xf32>
      %c0_20 = arith.constant 0 : index
      %c0_21 = arith.constant 0 : index
      %40 = vector.load %arg6[%c0_20, %c0_21] : memref<8x1xf32, #tpu.memory_space<vmem>>, vector<8x1xf32>
      tpu.vector_store %arg6[%c0_20, %c0_21], %39 {strides = array<i32>} : memref<8x1xf32, #tpu.memory_space<vmem>>, vector<8x1xf32>,
      %cst_22 = arith.constant 0.000000e+00 : f32
      %41 = vector.broadcast %cst_22 : f32 to vector<8x1xf32>
      %c0_23 = arith.constant 0 : index
      %c0_24 = arith.constant 0 : index
      %42 = vector.load %arg7[%c0_23, %c0_24] : memref<8x1xf32, #tpu.memory_space<vmem>>, vector<8x1xf32>
      tpu.vector_store %arg7[%c0_23, %c0_24], %41 {strides = array<i32>} : memref<8x1xf32, #tpu.memory_space<vmem>>, vector<8x1xf32>,
    } else {
    }
    %c0 = arith.constant 0 : index
    %c0_1 = arith.constant 0 : index
    %3 = vector.load %arg3[%c0, %c0_1] : memref<8x1xf32, #tpu.memory_space<vmem>>, vector<8x1xf32>
    %c0_2 = arith.constant 0 : index
    %c0_3 = arith.constant 0 : index
    %4 = vector.load %arg4[%c0_2, %c0_3] : memref<1x128xf32, #tpu.memory_space<vmem>>, vector<1x128xf32>
    %c0_4 = arith.constant 0 : index
    %c0_5 = arith.constant 0 : index
    %5 = vector.load %arg5[%c0_4, %c0_5] : memref<8x1xf32, #tpu.memory_space<vmem>>, vector<8x1xf32>
    %6 = vector.broadcast %4 : vector<1x128xf32> to vector<8x128xf32>
    %7 = vector.broadcast %3 : vector<8x1xf32> to vector<8x128xf32>
    %8 = arith.subf %6, %7 : vector<8x128xf32>
    %cst = arith.constant 0.000000e+00 : f32
    %9 = vector.broadcast %cst : f32 to vector<8x128xf32>
    %10 = arith.maximumf %8, %9 : vector<8x128xf32>
    %11 = arith.mulf %10, %10 : vector<8x128xf32>
    %12 = vector.broadcast %5 : vector<8x1xf32> to vector<8x128xf32>
    %13 = arith.cmpf ogt, %11, %12 : vector<8x128xf32>
    %c128_i32 = arith.constant 128 : i32
    %14 = arith.muli %arg1, %c128_i32 : i32
    %15 = tpu.iota {dimensions = array<i32: 1>} : vector<1x128xi32>
    %16 = vector.broadcast %14 : i32 to vector<1x128xi32>
    %17 = arith.addi %16, %15 : vector<1x128xi32>
    %c0_6 = arith.constant 0 : index
    %18 = memref.load %arg2[%c0_6] : memref<1xi32, #tpu.memory_space<smem>>
    %19 = vector.broadcast %18 : i32 to vector<1x128xi32>
    %20 = arith.cmpi slt, %17, %19 : vector<1x128xi32>
    %21 = arith.extui %20 : vector<1x128xi1> to vector<1x128xi32>
    %22 = arith.sitofp %21 : vector<1x128xi32> to vector<1x128xf32>
    %cst_7 = arith.constant 0.000000e+00 : f32
    %23 = vector.broadcast %cst_7 : f32 to vector<8x128xf32>
    %24 = arith.select %13, %11, %23 : vector<8x128xi1>, vector<8x128xf32>
    %cst_8 = arith.constant 0.000000e+00 : f32
    %25 = vector.shape_cast %22 : vector<1x128xf32> to vector<1x128xf32>
    %26 = vector.broadcast %25 : vector<1x128xf32> to vector<8x128xf32>
    %27 = vector.broadcast %cst_8 : f32 to vector<8x128xf32>
    %28 = arith.select %13, %26, %27 : vector<8x128xi1>, vector<8x128xf32>
    %c0_9 = arith.constant 0 : index
    %c0_10 = arith.constant 0 : index
    %29 = vector.load %arg6[%c0_9, %c0_10] : memref<8x1xf32, #tpu.memory_space<vmem>>, vector<8x1xf32>
    %cst_11 = arith.constant dense<0.000000e+00> : vector<8xf32>
    %30 = vector.multi_reduction <add>, %24, %cst_11 [1] : vector<8x128xf32> to vector<8xf32>
    %31 = vector.shape_cast %30 : vector<8xf32> to vector<8x1xf32>
    %32 = arith.addf %29, %31 : vector<8x1xf32>
    %c0_12 = arith.constant 0 : index
    %c0_13 = arith.constant 0 : index
    %33 = vector.load %arg6[%c0_12, %c0_13] : memref<8x1xf32, #tpu.memory_space<vmem>>, vector<8x1xf32>
    tpu.vector_store %arg6[%c0_12, %c0_13], %32 {strides = array<i32>} : memref<8x1xf32, #tpu.memory_space<vmem>>, vector<8x1xf32>,
    %c0_14 = arith.constant 0 : index
    %c0_15 = arith.constant 0 : index
    %34 = vector.load %arg7[%c0_14, %c0_15] : memref<8x1xf32, #tpu.memory_space<vmem>>, vector<8x1xf32>
    %cst_16 = arith.constant dense<0.000000e+00> : vector<8xf32>
    %35 = vector.multi_reduction <add>, %28, %cst_16 [1] : vector<8x128xf32> to vector<8xf32>
    %36 = vector.shape_cast %35 : vector<8xf32> to vector<8x1xf32>
    %37 = arith.addf %34, %36 : vector<8x1xf32>
    %c0_17 = arith.constant 0 : index
    %c0_18 = arith.constant 0 : index
    %38 = vector.load %arg7[%c0_17, %c0_18] : memref<8x1xf32, #tpu.memory_space<vmem>>, vector<8x1xf32>
    tpu.vector_store %arg7[%c0_17, %c0_18], %37 {strides = array<i32>} : memref<8x1xf32, #tpu.memory_space<vmem>>, vector<8x1xf32>,
    return
  }
  func.func @transform_0(%arg0: i32, %arg1: i32, %arg2: memref<1xi32, #tpu.memory_space<smem>>) -> (i32, i32) {
    %c0_i32 = arith.constant 0 : i32
    %c0_i32_0 = arith.constant 0 : i32
    return %arg0, %c0_i32 : i32, i32
  }
  func.func @transform_1(%arg0: i32, %arg1: i32, %arg2: memref<1xi32, #tpu.memory_space<smem>>) -> (i32, i32) {
    %c0_i32 = arith.constant 0 : i32
    %c0_i32_0 = arith.constant 0 : i32
    return %c0_i32, %arg1 : i32, i32
  }
  func.func @transform_2(%arg0: i32, %arg1: i32, %arg2: memref<1xi32, #tpu.memory_space<smem>>) -> (i32, i32) {
    %c0_i32 = arith.constant 0 : i32
    %c0_i32_0 = arith.constant 0 : i32
    return %arg0, %c0_i32 : i32, i32
  }
  func.func @transform_3(%arg0: i32, %arg1: i32, %arg2: memref<1xi32, #tpu.memory_space<smem>>) -> (i32, i32) {
    %c0_i32 = arith.constant 0 : i32
    %c0_i32_0 = arith.constant 0 : i32
    return %arg0, %c0_i32 : i32, i32
  }
  func.func @transform_4(%arg0: i32, %arg1: i32, %arg2: memref<1xi32, #tpu.memory_space<smem>>) -> (i32, i32) {
    %c0_i32 = arith.constant 0 : i32
    %c0_i32_0 = arith.constant 0 : i32
    return %arg0, %c0_i32 : i32, i32
  }
}

</mosaic_0001>

<bundles_post_ra>
// kernel: tpu_custom_call.1
= control target key start
LH: loop header
LB: loop body
LE: loop exit
PB: predicated region body
PF: predicated region fallthrough
CT: control target
= control target key end

     0   :  { %v84_v0 = vmov 0   ;;  %vm22_vm0 = vcmask 7168   ;;  %v85_v3 = vmov 0.0   ;;  %v49_v5 = vlaneseq  ;;  %s150_s1 = inlined_call_operand.vmem [shape: f32[8,1], index: 1, kind: input, shape index: {}]   ;;  %s151_s3 = inlined_call_operand.vmem [shape: f32[8,1], index: 3, kind: input, shape index: {}]   ;;  %s152_s4 = inlined_call_operand.vmem [shape: f32[8,1], index: 4, kind: output, shape index: {0}]   ;;  %s153_s2 = inlined_call_operand.vmem [shape: f32[1,128], index: 2, kind: input, shape index: {}]   ;;  %s154_s0 = inlined_call_operand.<no memory space> [shape: s32[1], index: 0, kind: input, shape index: {}]   ;;  %s155_s5 = inlined_call_operand.vmem [shape: f32[8,1], index: 5, kind: output, shape index: {1}]  }
   0x1   :  { %83 = vset.pattern.permute.xlu0 %v84_v0  ;;  %v25_v1 = vld [vmem:[%s150_s1] sm:$0xff]  ;;  %23 = vst.msk [vmem:[%s152_s4] sm:$0xff] %vm22_vm0, %v85_v3  ;;  %v54_v10 = vstv %s154_s0  ;;  %24 = vst.msk [vmem:[%s155_s5] sm:$0xff] %vm22_vm0, %v85_v3 }
   0x2   :  { %36 = vperm.xlu0 %83, %v25_v1   ;;  %v27_v2 = vld [vmem:[%s151_s3] sm:$0xff]  ;;  %v50_v8 = vand.u32 127, %v49_v5 }
   0x3   :  { %v79_v4 = vld [vmem:[%s153_s2] ss:$0 sm:$0xff] }
   0x4   :  { %vm55_vm1 = vcmp.lt.s32.totalorder %v50_v8, %v54_v10 }
   0x5   :  { %v80_v14 = vsel %vm55_vm1, 1.0, %v85_v3 }
   0x6   :  { %44 = vperm.xlu0 %83, %v27_v2  }
   0x8   :  { %v60_v16 = vld [vmem:[%s152_s4] sm:$0xff] }
   0x9   :  { %v66_v19 = vld [vmem:[%s155_s5] sm:$0xff] }
  0x81   :  { %v37_v6 = vpop.permute.xlu0 %36 }
  0x82   :  { %v39_v7 = vsub.f32 %v79_v4, %v37_v6 }
  0x84   :  { %v40_v9 = vmax.f32 %v39_v7, 0.0 }
  0x85   :  { %v45_v12 = vpop.permute.xlu0 %44 }
  0x86   :  { %v41_v11 = vmul.f32 %v40_v9, %v40_v9 }
  0x88   :  { %vm47_vm2 = vcmp.gt.f32.partialorder %v41_v11, %v45_v12 }
  0x89   :  { %v58_v13 = vsel %vm47_vm2, %v41_v11, 0.0  ;;  %v59_v15 = vsel %vm47_vm2, %v80_v14, 0.0 }
  0x8a   :  { %61 = vadd.xlane.f32.xlu1 %v58_v13 }
  0x8e   :  { %67 = vadd.xlane.f32.xlu1 %v59_v15 }
 0x117   :  { %v62_v17 = vpop.xlane.xlu1 %61 }
 0x118   :  { %v63_v18 = vadd.f32 %v62_v17, %v60_v16 }
 0x11a   :  { %65 = vst.msk [vmem:[%s152_s4] sm:$0xff] %vm22_vm0, %v63_v18 }
 0x11b   :  { %v68_v20 = vpop.xlane.xlu1 %67 }
 0x11c   :  { %v69_v21 = vadd.f32 %v68_v20, %v66_v19 }
 0x11e   :  { %70 = vst.msk [vmem:[%s155_s5] sm:$0xff] %vm22_vm0, %v69_v21 }

</bundles_post_ra>
